<compile_context>
chip_gen: v5e
topology: v5e:2x2
jax: 0.10.0
libtpu: 0.0.40
codegen_flags: <defaults>
</compile_context>

<pallas_src>
import functools

import numpy as np

import jax
import jax.numpy as jnp
from jax import lax
from jax.experimental import pallas as pl
from jax.experimental.pallas import tpu as pltpu

NUM_CLASS = 4
FEAT_DIM = 256
HID1 = 128
HID2 = 64

# 8192 rows/tile: 8 MiB per f32 buffer (4 MiB bf16); double-buffered 16 MiB (8 MiB),
# amortizes the ~0.35 us/step grid overhead on every generation; explicit
# vmem_limit_bytes below keeps it legal on v5e's 16 MiB default scoped limit too.
_DEFAULT_TILE_N = 8192


def _round_up(x, m):
    return ((x + m - 1) // m) * m


def _weather_clf_kernel(blk_ref, bat_ref, lo_ref, hi_ref, init_ref, fin_ref,   # SMEM schedule
                        x_ref, w1_ref, b1_ref, w2_ref, b2_ref, w3_ref, b3_ref,
                        out_ref, pooled_ref, *, tile_n):
    """One flattened grid step = one point-feature tile of one batch segment.

    blk/bat/lo/hi/init/fin: [T] int32 SMEM per-step schedule
    x_ref   : [tile_n, 256] VMEM point-feature tile (native dtype, upcast here)
    w*_ref  : pre-transposed weights [C_in, C_out]; b*_ref: [1, C_out]
    out_ref : [1, 1, 4] f32 per-batch logits block
    pooled_ref: [8, 256] f32 running partial-max scratch
    """
    t = pl.program_id(0)
    lo = lo_ref[t]
    hi = hi_ref[t]

    # (Re)initialize the running [8, 256] partial max at the first tile of a batch.
    @pl.when(init_ref[t] == 1)
    def _init():
        pooled_ref[...] = jnp.full(pooled_ref.shape, -jnp.inf, jnp.float32)

    full_tile = jnp.logical_and(lo == 0, hi == tile_n)

    # Interior tile: every row belongs to this batch -> plain max, no mask/select.
    @pl.when(full_tile)
    def _accumulate_full():
        x = x_ref[...].astype(jnp.float32)
        part = jnp.max(x.reshape(tile_n // 8, 8, FEAT_DIM), axis=0)     # VALU only
        pooled_ref[...] = jnp.maximum(pooled_ref[...], part)

    # Boundary tile (or batch smaller than a tile): mask rows outside [lo, hi).
    @pl.when(jnp.logical_and(lo < hi, jnp.logical_not(full_tile)))
    def _accumulate_masked():
        rid = lax.broadcasted_iota(jnp.int32, (tile_n, 1), 0)
        mask = jnp.logical_and(rid >= lo, rid < hi)
        x = jnp.where(mask, x_ref[...].astype(jnp.float32), -jnp.inf)
        part = jnp.max(x.reshape(tile_n // 8, 8, FEAT_DIM), axis=0)
        pooled_ref[...] = jnp.maximum(pooled_ref[...], part)

    # Last tile of the batch: 8->1 cross-sublane reduce + MLP head, write logits.
    @pl.when(fin_ref[t] == 1)
    def _finalize():
        pooled = jnp.max(pooled_ref[...], axis=0, keepdims=True)        # [1, 256]
        h = jnp.dot(pooled, w1_ref[...], preferred_element_type=jnp.float32)
        h = jnp.maximum(h + b1_ref[...], 0.0)                           # ReLU(fc1)
        h = jnp.dot(h, w2_ref[...], preferred_element_type=jnp.float32)
        h = jnp.maximum(h + b2_ref[...], 0.0)                           # ReLU(fc2)
        res = jnp.dot(h, w3_ref[...], preferred_element_type=jnp.float32) + b3_ref[...]
        out_ref[...] = res.reshape(1, 1, NUM_CLASS)                     # fc3 (no act)


def _build_schedule(bids, batch_size, tile_n, t_total, nblk):
    """Device-side flattened (batch, tile) schedule (requires sorted batch ids)."""
    bids = bids.astype(jnp.int32)
    bvals = jnp.arange(batch_size, dtype=jnp.int32)
    ends = jnp.searchsorted(bids, bvals, side="right").astype(jnp.int32)      # offs[1:]
    starts = jnp.concatenate([jnp.zeros((1,), jnp.int32), ends[:-1]])         # offs[:-1]
    nonempty = ends > starts

    blk_start = jnp.where(nonempty, starts // tile_n, 0)
    blk_last = jnp.where(nonempty, (jnp.maximum(ends, 1) - 1) // tile_n, 0)
    cnt = jnp.where(nonempty, blk_last - blk_start + 1, 1).astype(jnp.int32)  # >=1 per batch
    cum = jnp.cumsum(cnt).astype(jnp.int32)                                   # [B]
    total = cum[-1]                                                           # useful steps
    cum_start = cum - cnt

    t_arr = jnp.arange(t_total, dtype=jnp.int32)
    bat = jnp.minimum(jnp.searchsorted(cum, t_arr, side="right").astype(jnp.int32),
                      batch_size - 1)
    local = t_arr - cum_start[bat]
    blk = jnp.clip(blk_start[bat] + local, 0, nblk - 1)
    in_range = t_arr < total
    last_blk = blk[jnp.clip(total - 1, 0, t_total - 1)]
    blk = jnp.where(in_range, blk, last_blk).astype(jnp.int32)   # padded steps: no new DMA

    base = blk * tile_n
    valid = jnp.logical_and(in_range, nonempty[bat])
    lo = jnp.where(valid, jnp.clip(starts[bat] - base, 0, tile_n), 0).astype(jnp.int32)
    hi = jnp.where(valid, jnp.clip(ends[bat] - base, 0, tile_n), 0).astype(jnp.int32)
    is_init = jnp.logical_and(in_range, local == 0).astype(jnp.int32)
    is_fin = jnp.logical_and(in_range, local == cnt[bat] - 1).astype(jnp.int32)
    return blk, bat, lo, hi, is_init, is_fin


def prepare_clf_params(params):
    """One-time glue: nn.Linear weights [out,in] -> [in,out], biases -> [1,out]."""
    return dict(
        w1=jnp.asarray(params["fc1_w"]).T, b1=jnp.asarray(params["fc1_b"]).reshape(1, -1),
        w2=jnp.asarray(params["fc2_w"]).T, b2=jnp.asarray(params["fc2_b"]).reshape(1, -1),
        w3=jnp.asarray(params["fc3_w"]).T, b3=jnp.asarray(params["fc3_b"]).reshape(1, -1),
    )


def weather_clf_forward(pts_feature, coords, batch_size, prepared_params, *, tile_n=None):
    """Pallas wrapper for the weather-classifier head (segment max-pool + 3-layer MLP)."""
    n, feat = pts_feature.shape
    assert feat == FEAT_DIM and n >= 1 and batch_size >= 1

    itemsize = np.dtype(pts_feature.dtype).itemsize
    if tile_n is None:
        tile_n = min(_DEFAULT_TILE_N, _round_up(n, 16))
    tile_n = max(16, _round_up(int(tile_n), 16))          # mult. of 16: bf16 (16,128) tiling
    # Cap per-buffer footprint at 16 MiB (double-buffered <= 32 MiB).
    tile_n = min(tile_n, max(16, ((16 << 20) // (FEAT_DIM * itemsize)) // 16 * 16))

    nblk = pl.cdiv(n, tile_n)
    # Contiguous segments each straddle at most one extra tile -> static upper bound.
    t_total = nblk + batch_size

    blk, bat, lo, hi, is_init, is_fin = _build_schedule(
        jnp.asarray(coords)[:, 0], batch_size, tile_n, t_total, nblk)

    const_map = lambda t, *pf: (0, 0)
    x_map = lambda t, blk_r, *pf: (blk_r[t], 0)
    out_map = lambda t, blk_r, bat_r, *pf: (bat_r[t], 0, 0)

    kernel = functools.partial(_weather_clf_kernel, tile_n=tile_n)

    grid_spec = pltpu.PrefetchScalarGridSpec(
        num_scalar_prefetch=6,
        grid=(t_total,),
        in_specs=[
            pl.BlockSpec((tile_n, FEAT_DIM), x_map),        # point features (tiled, native dtype)
            pl.BlockSpec((FEAT_DIM, HID1), const_map),      # fc1 weight (resident)
            pl.BlockSpec((1, HID1), const_map),             # fc1 bias
            pl.BlockSpec((HID1, HID2), const_map),          # fc2 weight
            pl.BlockSpec((1, HID2), const_map),             # fc2 bias
            pl.BlockSpec((HID2, NUM_CLASS), const_map),     # fc3 weight
            pl.BlockSpec((1, NUM_CLASS), const_map),        # fc3 bias
        ],
        out_specs=pl.BlockSpec((1, 1, NUM_CLASS), out_map),
        scratch_shapes=[pltpu.VMEM((8, FEAT_DIM), jnp.float32)],
    )

    # Explicit scoped-VMEM limit: independent of per-generation defaults
    # (<= 48 MiB keeps headroom even on v7x's 64 MiB physical VMEM).
    vmem_limit = int(min(2 * tile_n * FEAT_DIM * itemsize + (16 << 20), 48 << 20))

    out3 = pl.pallas_call(
        kernel,
        out_shape=jax.ShapeDtypeStruct((batch_size, 1, NUM_CLASS), jnp.float32),
        grid_spec=grid_spec,
        compiler_params=pltpu.CompilerParams(
            dimension_semantics=("arbitrary",),
            vmem_limit_bytes=vmem_limit),
    )(blk, bat, lo, hi, is_init, is_fin,
      pts_feature,
      prepared_params["w1"], prepared_params["b1"],
      prepared_params["w2"], prepared_params["b2"],
      prepared_params["w3"], prepared_params["b3"])

    return out3[:, 0, :]                                    # [B, NUM_CLASS]


def cylinder_asym_forward(coords, features_3d, pts_feature, batch_size, prepared_params):
    """Mirror of cylinder_asym_clf_v7.forward after the generator stage.

    Returns (spatial_features, weather_result), matching the PyTorch module.
    """
    # TODO(synk): cylinder_3d_spconv_seg is an externally-injected sparse-conv
    # segmentation U-net (spconv submanifold convs) with no Pallas equivalent.
    spatial_features = None
    weather_result = weather_clf_forward(pts_feature, coords, batch_size, prepared_params)
    return spatial_features, weather_result


def _init_test_clf_params(key):
    """Deterministic init matching nn.Linear shapes (uniform +/- 1/sqrt(fan_in))."""
    ks = jax.random.split(key, 6)

    def lin(kw, kb, out_f, in_f):
        bound = 1.0 / jnp.sqrt(jnp.float32(in_f))
        w = jax.random.uniform(kw, (out_f, in_f), jnp.float32, -bound, bound)
        b = jax.random.uniform(kb, (out_f,), jnp.float32, -bound, bound)
        return w, b

    fc1_w, fc1_b = lin(ks[0], ks[1], HID1, FEAT_DIM)
    fc2_w, fc2_b = lin(ks[2], ks[3], HID2, HID1)
    fc3_w, fc3_b = lin(ks[4], ks[5], NUM_CLASS, HID2)
    # NOTE: the classifier head defines nn.Dropout(p=0.4) but never applies it.
    return dict(fc1_w=fc1_w, fc1_b=fc1_b,
                fc2_w=fc2_w, fc2_b=fc2_b,
                fc3_w=fc3_w, fc3_b=fc3_b)


def _reference_forward(pts_feature, coords, batch_size, params):
    """Pure-JAX re-implementation of the classifier head for correctness checks."""
    x = pts_feature.astype(jnp.float32)
    bids = coords[:, 0]
    outs = []
    for b in range(batch_size):
        mask = (bids == b)[:, None]
        pooled = jnp.max(jnp.where(mask, x, -jnp.inf), axis=0)
        h = jax.nn.relu(pooled @ params["fc1_w"].T + params["fc1_b"])
        h = jax.nn.relu(h @ params["fc2_w"].T + params["fc2_b"])
        outs.append(h @ params["fc3_w"].T + params["fc3_b"])
    return jnp.stack(outs, axis=0)


if __name__ == "__main__":
    key = jax.random.PRNGKey(0)
    k_params, k_feat1, k_vox1, k_feat2, k_vox2, k_feat3, k_vox3 = jax.random.split(key, 7)

    params = _init_test_clf_params(k_params)
    prepared = prepare_clf_params(params)          # one-time transposes, off the hot path

    # --- case 1: small balanced batches, f32, via the module-level facade -------
    batch_size = 2
    n_points = 64
    batch_ids = jnp.repeat(jnp.arange(batch_size, dtype=jnp.int32), n_points // batch_size)
    vox_idx = jax.random.randint(k_vox1, (n_points, 3), 0, 16, dtype=jnp.int32)
    coords = jnp.concatenate([batch_ids[:, None], vox_idx], axis=1)            # [N, 4]
    pts_feature = jax.random.normal(k_feat1, (n_points, FEAT_DIM), jnp.float32)
    features_3d = jax.random.normal(k_feat1, (n_points, 16), jnp.float32)      # unused (spconv path)

    spatial_features, weather_result = cylinder_asym_forward(
        coords, features_3d, pts_feature, batch_size, prepared)
    weather_result = jax.block_until_ready(weather_result)
    ref1 = _reference_forward(pts_feature, coords, batch_size, params)
    assert weather_result.shape == (batch_size, NUM_CLASS)
    assert jnp.allclose(weather_result, ref1, atol=1e-4, rtol=1e-4)

    # --- case 2: uneven segments + multi-tile grid (masked + unmasked), jitted --
    counts2 = np.array([130, 70])
    n2 = int(counts2.sum())
    batch_ids2 = jnp.asarray(np.repeat(np.arange(2), counts2).astype(np.int32))
    vox2 = jax.random.randint(k_vox2, (n2, 3), 0, 16, dtype=jnp.int32)
    coords2 = jnp.concatenate([batch_ids2[:, None], vox2], axis=1)
    pts2 = jax.random.normal(k_feat2, (n2, FEAT_DIM), jnp.float32)

    fwd = jax.jit(weather_clf_forward, static_argnames=("batch_size", "tile_n"))
    out2 = jax.block_until_ready(
        fwd(pts2, coords2, batch_size=2, prepared_params=prepared, tile_n=64))
    ref2 = _reference_forward(pts2, coords2, 2, params)
    assert out2.shape == (2, NUM_CLASS)
    assert jnp.allclose(out2, ref2, atol=1e-4, rtol=1e-4)

    # --- case 3: bf16 ingest (native-dtype DMA, in-kernel upcast) ----------------
    counts3 = np.array([40, 110])
    n3 = int(counts3.sum())
    batch_ids3 = jnp.asarray(np.repeat(np.arange(2), counts3).astype(np.int32))
    vox3 = jax.random.randint(k_vox3, (n3, 3), 0, 16, dtype=jnp.int32)
    coords3 = jnp.concatenate([batch_ids3[:, None], vox3], axis=1)
    pts3 = jax.random.normal(k_feat3, (n3, FEAT_DIM), jnp.float32).astype(jnp.bfloat16)

    out3 = jax.block_until_ready(
        weather_clf_forward(pts3, coords3, 2, prepared, tile_n=48))
    ref3 = _reference_forward(pts3, coords3, 2, params)
    assert out3.shape == (2, NUM_CLASS)
    assert jnp.allclose(out3, ref3, atol=5e-4, rtol=5e-4)

    print("KERNEL_OK")
</pallas_src>

<mosaic_0001>
module attributes {stable_mosaic.version = 11 : i64} {
  func.func @_weather_clf_kernel(%arg0: i32, %arg1: memref<3xi32, #tpu.memory_space<smem>>, %arg2: memref<3xi32, #tpu.memory_space<smem>>, %arg3: memref<3xi32, #tpu.memory_space<smem>>, %arg4: memref<3xi32, #tpu.memory_space<smem>>, %arg5: memref<3xi32, #tpu.memory_space<smem>>, %arg6: memref<3xi32, #tpu.memory_space<smem>>, %arg7: memref<64x256xf32, #tpu.memory_space<vmem>>, %arg8: memref<256x128xf32, #tpu.memory_space<vmem>>, %arg9: memref<1x128xf32, #tpu.memory_space<vmem>>, %arg10: memref<128x64xf32, #tpu.memory_space<vmem>>, %arg11: memref<1x64xf32, #tpu.memory_space<vmem>>, %arg12: memref<64x4xf32, #tpu.memory_space<vmem>>, %arg13: memref<1x4xf32, #tpu.memory_space<vmem>>, %arg14: memref<1x1x4xf32, #tpu.memory_space<vmem>>, %arg15: memref<8x256xf32, #tpu.memory_space<vmem>>) attributes {dimension_semantics = [#tpu.dimension_semantics<arbitrary>], iteration_bounds = array<i64: 3>, scalar_prefetch = 6 : i64, scratch_operands = 1 : i64, tpu.core_type = #tpu.core_type<tc>, window_params = [{transform_indices = @transform_0, window_bounds = array<i64: 64, 256>}, {pipeline_mode = #tpu.pipeline_mode<synchronous>, transform_indices = @transform_1, window_bounds = array<i64: 256, 128>}, {pipeline_mode = #tpu.pipeline_mode<synchronous>, transform_indices = @transform_2, window_bounds = array<i64: 1, 128>}, {pipeline_mode = #tpu.pipeline_mode<synchronous>, transform_indices = @transform_3, window_bounds = array<i64: 128, 64>}, {pipeline_mode = #tpu.pipeline_mode<synchronous>, transform_indices = @transform_4, window_bounds = array<i64: 1, 64>}, {pipeline_mode = #tpu.pipeline_mode<synchronous>, transform_indices = @transform_5, window_bounds = array<i64: 64, 4>}, {pipeline_mode = #tpu.pipeline_mode<synchronous>, transform_indices = @transform_6, window_bounds = array<i64: 1, 4>}, {transform_indices = @transform_7, window_bounds = array<i64: 1, 1, 4>}]} {
    %0 = arith.index_cast %arg0 : i32 to index
    %1 = memref.load %arg3[%0] : memref<3xi32, #tpu.memory_space<smem>>
    %2 = arith.index_cast %arg0 : i32 to index
    %3 = memref.load %arg4[%2] : memref<3xi32, #tpu.memory_space<smem>>
    %4 = arith.index_cast %arg0 : i32 to index
    %5 = memref.load %arg5[%4] : memref<3xi32, #tpu.memory_space<smem>>
    %c1_i32 = arith.constant 1 : i32
    %6 = arith.cmpi eq, %5, %c1_i32 : i32
    %7 = arith.extui %6 : i1 to i32
    %c0_i32 = arith.constant 0 : i32
    %8 = arith.cmpi ne, %7, %c0_i32 : i32
    scf.if %8 {
      %cst = arith.constant 0xFF800000 : f32
      %24 = vector.broadcast %cst : f32 to vector<8x256xf32>
      %c0 = arith.constant 0 : index
      %c0_5 = arith.constant 0 : index
      %25 = vector.load %arg15[%c0, %c0_5] : memref<8x256xf32, #tpu.memory_space<vmem>>, vector<8x256xf32>
      tpu.vector_store %arg15[%c0, %c0_5], %24 {strides = array<i32>} : memref<8x256xf32, #tpu.memory_space<vmem>>, vector<8x256xf32>,
    } else {
    }
    %c0_i32_0 = arith.constant 0 : i32
    %9 = arith.cmpi eq, %1, %c0_i32_0 : i32
    %c64_i32 = arith.constant 64 : i32
    %10 = arith.cmpi eq, %3, %c64_i32 : i32
    %11 = arith.andi %9, %10 : i1
    %12 = arith.extui %11 : i1 to i32
    %c0_i32_1 = arith.constant 0 : i32
    %13 = arith.cmpi ne, %12, %c0_i32_1 : i32
    scf.if %13 {
      %c0 = arith.constant 0 : index
      %c0_5 = arith.constant 0 : index
      %24 = vector.load %arg7[%c0, %c0_5] : memref<64x256xf32, #tpu.memory_space<vmem>>, vector<64x256xf32>
      %25 = vector.shape_cast %24 : vector<64x256xf32> to vector<8x8x256xf32>
      %cst = arith.constant dense<0xFF800000> : vector<8x256xf32>
      %26 = vector.multi_reduction <maximumf>, %25, %cst [0] : vector<8x8x256xf32> to vector<8x256xf32>
      %c0_6 = arith.constant 0 : index
      %c0_7 = arith.constant 0 : index
      %27 = vector.load %arg15[%c0_6, %c0_7] : memref<8x256xf32, #tpu.memory_space<vmem>>, vector<8x256xf32>
      %28 = arith.maximumf %27, %26 : vector<8x256xf32>
      %c0_8 = arith.constant 0 : index
      %c0_9 = arith.constant 0 : index
      %29 = vector.load %arg15[%c0_8, %c0_9] : memref<8x256xf32, #tpu.memory_space<vmem>>, vector<8x256xf32>
      tpu.vector_store %arg15[%c0_8, %c0_9], %28 {strides = array<i32>} : memref<8x256xf32, #tpu.memory_space<vmem>>, vector<8x256xf32>,
    } else {
    }
    %14 = arith.cmpi slt, %1, %3 : i32
    %true = arith.constant true
    %15 = arith.xori %11, %true : i1
    %16 = arith.andi %14, %15 : i1
    %17 = arith.extui %16 : i1 to i32
    %c0_i32_2 = arith.constant 0 : i32
    %18 = arith.cmpi ne, %17, %c0_i32_2 : i32
    scf.if %18 {
      %24 = tpu.iota {dimensions = array<i32: 0>} : vector<64x1xi32>
      %25 = vector.broadcast %1 : i32 to vector<64x1xi32>
      %26 = arith.cmpi sge, %24, %25 : vector<64x1xi32>
      %27 = vector.broadcast %3 : i32 to vector<64x1xi32>
      %28 = arith.cmpi slt, %24, %27 : vector<64x1xi32>
      %29 = arith.andi %26, %28 : vector<64x1xi1>
      %c0 = arith.constant 0 : index
      %c0_5 = arith.constant 0 : index
      %30 = vector.load %arg7[%c0, %c0_5] : memref<64x256xf32, #tpu.memory_space<vmem>>, vector<64x256xf32>
      %cst = arith.constant 0xFF800000 : f32
      %31 = vector.shape_cast %29 : vector<64x1xi1> to vector<64x1xi1>
      %32 = vector.broadcast %31 : vector<64x1xi1> to vector<64x256xi1>
      %33 = vector.broadcast %cst : f32 to vector<64x256xf32>
      %34 = arith.select %32, %30, %33 : vector<64x256xi1>, vector<64x256xf32>
      %35 = vector.shape_cast %34 : vector<64x256xf32> to vector<8x8x256xf32>
      %cst_6 = arith.constant dense<0xFF800000> : vector<8x256xf32>
      %36 = vector.multi_reduction <maximumf>, %35, %cst_6 [0] : vector<8x8x256xf32> to vector<8x256xf32>
      %c0_7 = arith.constant 0 : index
      %c0_8 = arith.constant 0 : index
      %37 = vector.load %arg15[%c0_7, %c0_8] : memref<8x256xf32, #tpu.memory_space<vmem>>, vector<8x256xf32>
      %38 = arith.maximumf %37, %36 : vector<8x256xf32>
      %c0_9 = arith.constant 0 : index
      %c0_10 = arith.constant 0 : index
      %39 = vector.load %arg15[%c0_9, %c0_10] : memref<8x256xf32, #tpu.memory_space<vmem>>, vector<8x256xf32>
      tpu.vector_store %arg15[%c0_9, %c0_10], %38 {strides = array<i32>} : memref<8x256xf32, #tpu.memory_space<vmem>>, vector<8x256xf32>,
    } else {
    }
    %19 = arith.index_cast %arg0 : i32 to index
    %20 = memref.load %arg6[%19] : memref<3xi32, #tpu.memory_space<smem>>
    %c1_i32_3 = arith.constant 1 : i32
    %21 = arith.cmpi eq, %20, %c1_i32_3 : i32
    %22 = arith.extui %21 : i1 to i32
    %c0_i32_4 = arith.constant 0 : i32
    %23 = arith.cmpi ne, %22, %c0_i32_4 : i32
    scf.if %23 {
      %c0 = arith.constant 0 : index
      %c0_5 = arith.constant 0 : index
      %24 = vector.load %arg15[%c0, %c0_5] : memref<8x256xf32, #tpu.memory_space<vmem>>, vector<8x256xf32>
      %cst = arith.constant dense<0xFF800000> : vector<256xf32>
      %25 = vector.multi_reduction <maximumf>, %24, %cst [0] : vector<8x256xf32> to vector<256xf32>
      %26 = vector.shape_cast %25 : vector<256xf32> to vector<1x256xf32>
      %c0_6 = arith.constant 0 : index
      %c0_7 = arith.constant 0 : index
      %27 = vector.load %arg8[%c0_6, %c0_7] : memref<256x128xf32, #tpu.memory_space<vmem>>, vector<256x128xf32>
      %cst_8 = arith.constant dense<0.000000e+00> : vector<1x128xf32>
      %28 = tpu.matmul %26, %27, %cst_8 {dimension_numbers = #tpu.dot_dimension_numbers<[1], [0], [0], [1], [0, 0, 1, 1], [], []>} : vector<1x256xf32>, vector<256x128xf32>, vector<1x128xf32> -> vector<1x128xf32>
      %c0_9 = arith.constant 0 : index
      %c0_10 = arith.constant 0 : index
      %29 = vector.load %arg9[%c0_9, %c0_10] : memref<1x128xf32, #tpu.memory_space<vmem>>, vector<1x128xf32>
      %30 = arith.addf %28, %29 : vector<1x128xf32>
      %cst_11 = arith.constant 0.000000e+00 : f32
      %31 = vector.broadcast %cst_11 : f32 to vector<1x128xf32>
      %32 = arith.maximumf %30, %31 : vector<1x128xf32>
      %c0_12 = arith.constant 0 : index
      %c0_13 = arith.constant 0 : index
      %33 = vector.load %arg10[%c0_12, %c0_13] : memref<128x64xf32, #tpu.memory_space<vmem>>, vector<128x64xf32>
      %cst_14 = arith.constant dense<0.000000e+00> : vector<1x64xf32>
      %34 = tpu.matmul %32, %33, %cst_14 {dimension_numbers = #tpu.dot_dimension_numbers<[1], [0], [0], [1], [0, 0, 1, 1], [], []>} : vector<1x128xf32>, vector<128x64xf32>, vector<1x64xf32> -> vector<1x64xf32>
      %c0_15 = arith.constant 0 : index
      %c0_16 = arith.constant 0 : index
      %35 = vector.load %arg11[%c0_15, %c0_16] : memref<1x64xf32, #tpu.memory_space<vmem>>, vector<1x64xf32>
      %36 = arith.addf %34, %35 : vector<1x64xf32>
      %cst_17 = arith.constant 0.000000e+00 : f32
      %37 = vector.broadcast %cst_17 : f32 to vector<1x64xf32>
      %38 = arith.maximumf %36, %37 : vector<1x64xf32>
      %c0_18 = arith.constant 0 : index
      %c0_19 = arith.constant 0 : index
      %39 = vector.load %arg12[%c0_18, %c0_19] : memref<64x4xf32, #tpu.memory_space<vmem>>, vector<64x4xf32>
      %cst_20 = arith.constant dense<0.000000e+00> : vector<1x4xf32>
      %40 = tpu.matmul %38, %39, %cst_20 {dimension_numbers = #tpu.dot_dimension_numbers<[1], [0], [0], [1], [0, 0, 1, 1], [], []>} : vector<1x64xf32>, vector<64x4xf32>, vector<1x4xf32> -> vector<1x4xf32>
      %c0_21 = arith.constant 0 : index
      %c0_22 = arith.constant 0 : index
      %41 = vector.load %arg13[%c0_21, %c0_22] : memref<1x4xf32, #tpu.memory_space<vmem>>, vector<1x4xf32>
      %42 = arith.addf %40, %41 : vector<1x4xf32>
      %43 = vector.shape_cast %42 : vector<1x4xf32> to vector<1x1x4xf32>
      %c0_23 = arith.constant 0 : index
      %c0_24 = arith.constant 0 : index
      %c0_25 = arith.constant 0 : index
      %44 = vector.load %arg14[%c0_23, %c0_24, %c0_25] : memref<1x1x4xf32, #tpu.memory_space<vmem>>, vector<1x1x4xf32>
      tpu.vector_store %arg14[%c0_23, %c0_24, %c0_25], %43 {strides = array<i32>} : memref<1x1x4xf32, #tpu.memory_space<vmem>>, vector<1x1x4xf32>,
    } else {
    }
    return
  }
  func.func @transform_0(%arg0: i32, %arg1: memref<3xi32, #tpu.memory_space<smem>>, %arg2: memref<3xi32, #tpu.memory_space<smem>>, %arg3: memref<3xi32, #tpu.memory_space<smem>>, %arg4: memref<3xi32, #tpu.memory_space<smem>>, %arg5: memref<3xi32, #tpu.memory_space<smem>>, %arg6: memref<3xi32, #tpu.memory_space<smem>>) -> (i32, i32) {
    %0 = arith.index_cast %arg0 : i32 to index
    %1 = memref.load %arg1[%0] : memref<3xi32, #tpu.memory_space<smem>>
    %c0_i32 = arith.constant 0 : i32
    %c0_i32_0 = arith.constant 0 : i32
    return %1, %c0_i32 : i32, i32
  }
  func.func @transform_1(%arg0: i32, %arg1: memref<3xi32, #tpu.memory_space<smem>>, %arg2: memref<3xi32, #tpu.memory_space<smem>>, %arg3: memref<3xi32, #tpu.memory_space<smem>>, %arg4: memref<3xi32, #tpu.memory_space<smem>>, %arg5: memref<3xi32, #tpu.memory_space<smem>>, %arg6: memref<3xi32, #tpu.memory_space<smem>>) -> (i32, i32) {
    %c0_i32 = arith.constant 0 : i32
    %c0_i32_0 = arith.constant 0 : i32
    %c0_i32_1 = arith.constant 0 : i32
    return %c0_i32, %c0_i32_0 : i32, i32
  }
  func.func @transform_2(%arg0: i32, %arg1: memref<3xi32, #tpu.memory_space<smem>>, %arg2: memref<3xi32, #tpu.memory_space<smem>>, %arg3: memref<3xi32, #tpu.memory_space<smem>>, %arg4: memref<3xi32, #tpu.memory_space<smem>>, %arg5: memref<3xi32, #tpu.memory_space<smem>>, %arg6: memref<3xi32, #tpu.memory_space<smem>>) -> (i32, i32) {
    %c0_i32 = arith.constant 0 : i32
    %c0_i32_0 = arith.constant 0 : i32
    %c0_i32_1 = arith.constant 0 : i32
    return %c0_i32, %c0_i32_0 : i32, i32
  }
  func.func @transform_3(%arg0: i32, %arg1: memref<3xi32, #tpu.memory_space<smem>>, %arg2: memref<3xi32, #tpu.memory_space<smem>>, %arg3: memref<3xi32, #tpu.memory_space<smem>>, %arg4: memref<3xi32, #tpu.memory_space<smem>>, %arg5: memref<3xi32, #tpu.memory_space<smem>>, %arg6: memref<3xi32, #tpu.memory_space<smem>>) -> (i32, i32) {
    %c0_i32 = arith.constant 0 : i32
    %c0_i32_0 = arith.constant 0 : i32
    %c0_i32_1 = arith.constant 0 : i32
    return %c0_i32, %c0_i32_0 : i32, i32
  }
  func.func @transform_4(%arg0: i32, %arg1: memref<3xi32, #tpu.memory_space<smem>>, %arg2: memref<3xi32, #tpu.memory_space<smem>>, %arg3: memref<3xi32, #tpu.memory_space<smem>>, %arg4: memref<3xi32, #tpu.memory_space<smem>>, %arg5: memref<3xi32, #tpu.memory_space<smem>>, %arg6: memref<3xi32, #tpu.memory_space<smem>>) -> (i32, i32) {
    %c0_i32 = arith.constant 0 : i32
    %c0_i32_0 = arith.constant 0 : i32
    %c0_i32_1 = arith.constant 0 : i32
    return %c0_i32, %c0_i32_0 : i32, i32
  }
  func.func @transform_5(%arg0: i32, %arg1: memref<3xi32, #tpu.memory_space<smem>>, %arg2: memref<3xi32, #tpu.memory_space<smem>>, %arg3: memref<3xi32, #tpu.memory_space<smem>>, %arg4: memref<3xi32, #tpu.memory_space<smem>>, %arg5: memref<3xi32, #tpu.memory_space<smem>>, %arg6: memref<3xi32, #tpu.memory_space<smem>>) -> (i32, i32) {
    %c0_i32 = arith.constant 0 : i32
    %c0_i32_0 = arith.constant 0 : i32
    %c0_i32_1 = arith.constant 0 : i32
    return %c0_i32, %c0_i32_0 : i32, i32
  }
  func.func @transform_6(%arg0: i32, %arg1: memref<3xi32, #tpu.memory_space<smem>>, %arg2: memref<3xi32, #tpu.memory_space<smem>>, %arg3: memref<3xi32, #tpu.memory_space<smem>>, %arg4: memref<3xi32, #tpu.memory_space<smem>>, %arg5: memref<3xi32, #tpu.memory_space<smem>>, %arg6: memref<3xi32, #tpu.memory_space<smem>>) -> (i32, i32) {
    %c0_i32 = arith.constant 0 : i32
    %c0_i32_0 = arith.constant 0 : i32
    %c0_i32_1 = arith.constant 0 : i32
    return %c0_i32, %c0_i32_0 : i32, i32
  }
  func.func @transform_7(%arg0: i32, %arg1: memref<3xi32, #tpu.memory_space<smem>>, %arg2: memref<3xi32, #tpu.memory_space<smem>>, %arg3: memref<3xi32, #tpu.memory_space<smem>>, %arg4: memref<3xi32, #tpu.memory_space<smem>>, %arg5: memref<3xi32, #tpu.memory_space<smem>>, %arg6: memref<3xi32, #tpu.memory_space<smem>>) -> (i32, i32, i32) {
    %0 = arith.index_cast %arg0 : i32 to index
    %1 = memref.load %arg2[%0] : memref<3xi32, #tpu.memory_space<smem>>
    %c0_i32 = arith.constant 0 : i32
    %c0_i32_0 = arith.constant 0 : i32
    %c0_i32_1 = arith.constant 0 : i32
    return %1, %c0_i32, %c0_i32_0 : i32, i32, i32
  }
}

</mosaic_0001>

<bundles_post_ra>
// kernel: tpu_custom_call.1
= control target key start
LH: loop header
LB: loop body
LE: loop exit
PB: predicated region body
PF: predicated region fallthrough
CT: control target
= control target key end

     0   :  { %s1002_s14 = smov [#allocation4]   ;;  %s1003_s15 = smov [#allocation5]   ;;  %s1435_s0 = inlined_call_operand.vmem [shape: s32[3], index: 0, kind: input, shape index: {}]   ;;  %s1436_s6 = inlined_call_operand.vmem [shape: f32[64,256], index: 6, kind: input, shape index: {}]   ;;  %s1437_s7 = inlined_call_operand.hbm [shape: f32[256,128], index: 7, kind: input, shape index: {}]   ;;  %s1438_s8 = inlined_call_operand.vmem [shape: f32[1,128], index: 8, kind: input, shape index: {}]   ;;  %s1439_s9 = inlined_call_operand.vmem [shape: f32[128,64], index: 9, kind: input, shape index: {}]   ;;  %s1440_s10 = inlined_call_operand.vmem [shape: f32[1,64], index: 10, kind: input, shape index: {}]   ;;  %s1441_s11 = inlined_call_operand.vmem [shape: f32[64,4], index: 11, kind: input, shape index: {}]   ;;  %s1442_s12 = inlined_call_operand.vmem [shape: f32[1,4], index: 12, kind: input, shape index: {}]   ;;  %s1443_s13 = inlined_call_operand.hbm [shape: f32[2,1,4], index: 13, kind: output, shape index: {}]   ;;  %s1444_s1 = inlined_call_operand.vmem [shape: s32[3], index: 1, kind: input, shape index: {}]   ;;  %s1445_s2 = inlined_call_operand.vmem [shape: s32[3], index: 2, kind: input, shape index: {}]   ;;  %s1446_s3 = inlined_call_operand.vmem [shape: s32[3], index: 3, kind: input, shape index: {}]   ;;  %s1447_s4 = inlined_call_operand.vmem [shape: s32[3], index: 4, kind: input, shape index: {}]   ;;  %s1448_s5 = inlined_call_operand.vmem [shape: s32[3], index: 5, kind: input, shape index: {}]  }
   0x1   :  { %s19_s27 = sshll.u32 %s1435_s0, 4  ;;  %s24_s30 = sshll.u32 %s1444_s1, 4  ;;  %s20_s27 = int_to_ptr.vmem [resolvable:$true] %s19_s27  ;;  %s25_s30 = int_to_ptr.vmem [resolvable:$true] %s24_s30 }
   0x2   :  { %22 = dma.vmem_to_smem %s20_s27, 16, %s1002_s14, [#allocation3] }
   0x3   :  { %27 = dma.vmem_to_smem %s25_s30, 16, %s1003_s15, [#allocation3] }
   0x4   :  { %s29_s18 = sshll.u32 %s1445_s2, 4  ;;  %s34_s21 = sshll.u32 %s1446_s3, 4  ;;  %s30_s18 = int_to_ptr.vmem [resolvable:$true] %s29_s18  ;;  %s35_s21 = int_to_ptr.vmem [resolvable:$true] %s34_s21 }
   0x5   :  { %s1004_s0 = smov [#allocation6]   ;;  %s1005_s22 = smov [#allocation7]  }
   0x6   :  { %32 = dma.vmem_to_smem %s30_s18, 16, %s1004_s0, [#allocation3] }
   0x7   :  { %37 = dma.vmem_to_smem %s35_s21, 16, %s1005_s22, [#allocation3] }
   0x8   :  { %s39_s24 = sshll.u32 %s1447_s4, 4  ;;  %s44_s27 = sshll.u32 %s1448_s5, 4  ;;  %s40_s24 = int_to_ptr.vmem [resolvable:$true] %s39_s24  ;;  %s45_s27 = int_to_ptr.vmem [resolvable:$true] %s44_s27 }
   0x9   :  { %s1006_s2 = smov [#allocation8]   ;;  %s1007_s28 = smov [#allocation9]  }
   0xa   :  { %42 = dma.vmem_to_smem %s40_s24, 16, %s1006_s2, [#allocation3] }
   0xb   :  { %47 = dma.vmem_to_smem %s45_s27, 16, %s1007_s28, [#allocation3] }
   0xc   :  { %976 = dma.done.wait [#allocation3], 96 }
   0xd   :  { %977 = vsyncadd [#allocation3], 4294967200 }
   0xe   :  { %50 = sfence }
   0xf   :  { %51 = vsyncpa [#allocation11], 0 }
  0x10   :  { %52 = vsyncpa [#allocation12], 0 }
  0x11   :  { %54 = vsyncpa [#allocation12 + $0x1], 0  ;;  %s1100_s3 = smov 0   ;;  %s1102_s29 = smov 0  }
  0x12   :  { %s1104_s4 = smov 0   ;;  %s1106_s30 = smov 0  }
  0x13 LB: > { %s1121_s5 = sadd.s32 4294967295, %s1000_s30   ;;  %s754_s14 = sadd.s32 4294967294, %s1000_s30   ;;  %s1000_s30 = sphi %s1106_s30, %s1467_s30   ;;  %s996_s4 = sphi %s1104_s4, %s1466_s4   ;;  %s992_s29 = sphi %s1102_s29, %s1465_s29   ;;  %s988_s3 = sphi %s1100_s3, %s1464_s3  }
  0x14   : > { %s1125_s15 = sadd.s32 1, %s1000_s30   ;;  %s218_s16 = sld [smem:[#allocation5 + %s1000_s30]] }
  0x15   : > { %s219_s17 = sld [smem:[#allocation5 + %s1125_s15]]  ;;  %s223_s18 = sadd.s32 1, %s996_s4 }
  0x16   : > { %p233_p0 = scmp.ne.s32.totalorder %s996_s4, %s992_s29  ;;  %p234_p1 = scmp.eq.s32.totalorder %s1121_s5, 2 }
  0x17   : > { %p239_p2 = scmp.ne.s32.totalorder %s992_s29, %s988_s3  ;;  %p240_p3 = scmp.eq.s32.totalorder %s754_s14, 2 }
  0x18   : > { %p1135_p4 = por %p234_p1, %p233_p0  ;;  %p755_p5 = scmp.ge.s32.totalorder %s1000_s30, 1 }
  0x19   : > { %p1140_p6 = por %p240_p3, %p239_p2  ;;  %p247_p7 = scmp.lt.s32.totalorder %s1000_s30, 4 }
  0x1a   : > { %p785_p8 = scmp.eq.s32.totalorder %s1121_s5, 0  ;;  %s258_s1 = sshll.u32 %s1437_s7, 4  ;;  %s259_s1 = int_to_ptr.hbm [resolvable:$true] %s258_s1 }
  0x1b   : > { %s220_s21 = ssub.s32 %s218_s16, %s219_s17  ;;  %p248_p9 = pnand %p755_p5, %p247_p7 }
  0x1c   : > { %p221_p10 = scmp.eq.s32.totalorder %s220_s21, 0  ;;  %s1008_s24 = smov [#allocation10]  }
  0x1d   : > { %p777_p11 = pneg %p248_p9  ;;  %s260_s25 = sshll.u32 %s1008_s24, 4  ;;  %s261_s25 = int_to_ptr.vmem [resolvable:$true] %s260_s25 }
  0x1e   : > { %s1150_s23 = scalar_select %p221_p10, %s996_s4, %s223_s18  }
  0x1f   : > { %p778_p12 = pnand %p785_p8, %p777_p11  ;;  %s1009_s26 = smov 128  }
  0x20   : > { %s1010_s27 = smov 8   ;;  %303 = sbr.rel (%p248_p9) target bundleno = 585 (0x249), region = 48 }
  0x21   : > { %780 = dma.hbm_to_vmem [thread:$0]  (!%p778_p12), %s259_s1, 4096, %s261_s25, [#allocation11], %s1009_s26, %s1009_s26, %s1010_s27  }
  0x25   : > { %979 = dma.done.wait (%p785_p8), [#allocation11], 4096  }
  0x26   : > { %981 = vsyncadd (%p785_p8), [#allocation11], 4294963200  ;;  %s335_s2 = sand.u32 1, %s992_s29   ;;  %s337_s28 = sld [smem:[#allocation4 + %s1121_s5]] }
  0x27   : > { %s1161_s14 = sld [smem:[#allocation6 + %s1121_s5]]  ;;  %s1174_s24 = scalar_lea.vmem [#allocation13], %s335_s2 }
  0x28   : > { %s1164_s16 = sld [smem:[#allocation7 + %s1121_s5]] }
  0x29   : > { %s349_s17 = sld [smem:[#allocation8 + %s1121_s5]] }
  0x2c   : > { %s760_s18 = sshll.u32 %s337_s28, 3 }
  0x2d   : > { %p339_p13 = scmp.lt.s32.totalorder %s760_s18, 7 }
  0x2f   : > { %s1469_s18 = smov (!%p339_p13, %s760_s18), 7  ;;  %p763_p0 = scmp.ne.s32.totalorder %s349_s17, 1 }
  0x30   : > { %s768_s21 = sshll.u32 %s1469_s18, 4 }
  0x31   : > { %s1170_s1 = scalar_lea.vmem %s1436_s6, %s768_s21  ;;  %353 = sbr.rel (%p763_p0) target bundleno = 57 (0x39), region = 56 }
  0x36   : > { %v1011_v0 = vmov -inf  }
  0x37   : > { %354 = vst [vmem:[#allocation2] sm:$0xff] %v1011_v0 }
  0x38   : > { %355 = vst [vmem:[#allocation2 + $0x8] sm:$0xff] %v1011_v0 }
  0x39 PF: > { %p356_p1 = scmp.eq.s32.totalorder %s1161_s14, 0  ;;  %p357_p2 = scmp.eq.s32.totalorder %s1164_s16, 64 }
  0x3b   : > { %p1178_p3 = pnand %p357_p2, %p356_p1 }
  0x3d   : > { %361 = sbr.rel (%p1178_p3) target bundleno = 81 (0x51), region = 60 }
  0x42   : > { %v362_v1 = vld [vmem:[%s1170_s1] sm:$0xff]  ;;  %v364_v2 = vld [vmem:[%s1170_s1 + $0x10] sm:$0xff]  ;;  %v363_v12 = vld [vmem:[%s1170_s1 + $0x8] sm:$0xff] }
  0x43   : > { %v366_v3 = vld [vmem:[%s1170_s1 + $0x20] sm:$0xff]  ;;  %v368_v4 = vld [vmem:[%s1170_s1 + $0x30] sm:$0xff]  ;;  %v365_v13 = vld [vmem:[%s1170_s1 + $0x18] sm:$0xff] }
  0x44   : > { %v370_v5 = vld [vmem:[%s1170_s1 + $0x40] sm:$0xff]  ;;  %v372_v6 = vld [vmem:[%s1170_s1 + $0x50] sm:$0xff]  ;;  %v378_v7 = vmax.f32 %v362_v1, %v366_v3  ;;  %v379_v10 = vmax.f32 %v364_v2, %v368_v4  ;;  %v367_v14 = vld [vmem:[%s1170_s1 + $0x28] sm:$0xff] }
  0x45   : > { %v374_v8 = vld [vmem:[%s1170_s1 + $0x60] sm:$0xff]  ;;  %v376_v9 = vld [vmem:[%s1170_s1 + $0x70] sm:$0xff]  ;;  %v369_v16 = vld [vmem:[%s1170_s1 + $0x38] sm:$0xff]  ;;  %v385_v19 = vmax.f32 %v363_v12, %v367_v14 }
  0x46   : > { %v380_v11 = vmax.f32 %v378_v7, %v370_v5  ;;  %v381_v15 = vmax.f32 %v379_v10, %v372_v6  ;;  %v371_v17 = vld [vmem:[%s1170_s1 + $0x48] sm:$0xff]  ;;  %v373_v18 = vld [vmem:[%s1170_s1 + $0x58] sm:$0xff]  ;;  %v386_v22 = vmax.f32 %v365_v13, %v369_v16  ;;  %v392_v26 = vld [vmem:[#allocation2] sm:$0xff] }
  0x47   : > { %v375_v21 = vld [vmem:[%s1170_s1 + $0x68] sm:$0xff]  ;;  %v377_v24 = vld [vmem:[%s1170_s1 + $0x78] sm:$0xff]  ;;  %v387_v25 = vmax.f32 %v385_v19, %v371_v17 }
  0x48   : > { %v382_v20 = vmax.f32 %v380_v11, %v374_v8  ;;  %v383_v23 = vmax.f32 %v381_v15, %v376_v9  ;;  %v388_v27 = vmax.f32 %v386_v22, %v373_v18  ;;  %v393_v32 = vld [vmem:[#allocation2 + $0x8] sm:$0xff] }
  0x49   : > { %v389_v29 = vmax.f32 %v387_v25, %v375_v21 }
  0x4a   : > { %v384_v28 = vmax.f32 %v382_v20, %v383_v23  ;;  %v390_v30 = vmax.f32 %v388_v27, %v377_v24 }
  0x4c   : > { %v394_v31 = vmax.f32 %v392_v26, %v384_v28  ;;  %v391_v33 = vmax.f32 %v389_v29, %v390_v30 }
  0x4e   : > { %396 = vst [vmem:[#allocation2] sm:$0xff] %v394_v31  ;;  %v395_v34 = vmax.f32 %v393_v32, %v391_v33 }
  0x50   : > { %397 = vst [vmem:[#allocation2 + $0x8] sm:$0xff] %v395_v34 }
  0x51 PF: > { %p398_p5 = scmp.lt.s32.totalorder %s1161_s14, %s1164_s16 }
  0x53   : > { %p400_p7 = pnand %p398_p5, %p1178_p3 }
  0x55   : > { %403 = sbr.rel (%p400_p7) target bundleno = 115 (0x73), region = 64 }
  0x5a   : > { %v404_v35 = vlaneseq  ;;  %v1205_v37 = vstv %s1161_s14  ;;  %v1208_v38 = vstv %s1164_s16  ;;  %v439_v46 = vld [vmem:[%s1170_s1] sm:$0xff]  ;;  %v441_v47 = vld [vmem:[%s1170_s1 + $0x10] sm:$0xff]  ;;  %v502_v33 = vld [vmem:[#allocation2 + $0x8] sm:$0xff] }
  0x5b   : > { %v440_v48 = vld [vmem:[%s1170_s1 + $0x8] sm:$0xff]  ;;  %v442_v49 = vld [vmem:[%s1170_s1 + $0x18] sm:$0xff]  ;;  %v443_v51 = vld [vmem:[%s1170_s1 + $0x20] sm:$0xff] }
  0x5c   : > { %v405_v36 = vshrl.u32 %v404_v35, 7  ;;  %v444_v52 = vld [vmem:[%s1170_s1 + $0x28] sm:$0xff]  ;;  %v445_v54 = vld [vmem:[%s1170_s1 + $0x30] sm:$0xff]  ;;  %v446_v56 = vld [vmem:[%s1170_s1 + $0x38] sm:$0xff] }
  0x5d   : > { %v447_v58 = vld [vmem:[%s1170_s1 + $0x40] sm:$0xff]  ;;  %v448_v60 = vld [vmem:[%s1170_s1 + $0x48] sm:$0xff]  ;;  %v449_v0 = vld [vmem:[%s1170_s1 + $0x50] sm:$0xff] }
  0x5e   : > { %v406_v39 = vadd.s32 8, %v405_v36  ;;  %v407_v40 = vadd.s32 16, %v405_v36  ;;  %v408_v41 = vadd.s32 24, %v405_v36  ;;  %v409_v42 = vadd.s32 32, %v405_v36  ;;  %v450_v2 = vld [vmem:[%s1170_s1 + $0x58] sm:$0xff]  ;;  %v451_v5 = vld [vmem:[%s1170_s1 + $0x60] sm:$0xff] }
  0x5f   : > { %v410_v43 = vadd.s32 40, %v405_v36  ;;  %v411_v44 = vadd.s32 48, %v405_v36  ;;  %v412_v45 = vadd.s32 56, %v405_v36  ;;  %vm414_vm0 = vcmp.ge.s32.totalorder %v405_v36, %v1205_v37  ;;  %v452_v8 = vld [vmem:[%s1170_s1 + $0x68] sm:$0xff]  ;;  %v453_v12 = vld [vmem:[%s1170_s1 + $0x70] sm:$0xff]  ;;  %v454_v15 = vld [vmem:[%s1170_s1 + $0x78] sm:$0xff] }
  0x60   : > { %vm415_vm1 = vcmp.ge.s32.totalorder %v406_v39, %v1205_v37  ;;  %vm416_vm2 = vcmp.ge.s32.totalorder %v407_v40, %v1205_v37  ;;  %vm417_vm3 = vcmp.ge.s32.totalorder %v408_v41, %v1205_v37  ;;  %vm418_vm4 = vcmp.ge.s32.totalorder %v409_v42, %v1205_v37  ;;  %v501_v32 = vld [vmem:[#allocation2] sm:$0xff] }
  0x61   : > { %vm423_vm5 = vcmp.lt.s32.totalorder %v405_v36, %v1208_v38  ;;  %vm419_vm6 = vcmp.ge.s32.totalorder %v410_v43, %v1205_v37  ;;  %vm424_vm7 = vcmp.lt.s32.totalorder %v406_v39, %v1208_v38  ;;  %vm425_vm8 = vcmp.lt.s32.totalorder %v407_v40, %v1208_v38 }
  0x62   : > { %vm426_vm9 = vcmp.lt.s32.totalorder %v408_v41, %v1208_v38  ;;  %vm1224_vm10 = vmand %vm414_vm0, %vm423_vm5  ;;  %vm420_vm11 = vcmp.ge.s32.totalorder %v411_v44, %v1205_v37  ;;  %vm421_vm12 = vcmp.ge.s32.totalorder %v412_v45, %v1205_v37  ;;  %vm427_vm13 = vcmp.lt.s32.totalorder %v409_v42, %v1208_v38 }
  0x63   : > { %vm1235_vm14 = vmand %vm415_vm1, %vm424_vm7  ;;  %v471_v55 = vsel %vm1224_vm10, %v439_v46, -inf  ;;  %vm428_vm15 = vcmp.lt.s32.totalorder %v410_v43, %v1208_v38  ;;  %v472_v61 = vsel %vm1224_vm10, %v440_v48, -inf  ;;  %vm429_vm1 = vcmp.lt.s32.totalorder %v411_v44, %v1208_v38 }
  0x64   : > { %vm1246_vm0 = vmand %vm416_vm2, %vm425_vm8  ;;  %v473_v59 = vsel %vm1235_vm14, %v441_v47, -inf  ;;  %v474_v62 = vsel %vm1235_vm14, %v442_v49, -inf  ;;  %vm430_vm2 = vcmp.lt.s32.totalorder %v412_v45, %v1208_v38 }
  0x65   : > { %vm1264_vm5 = vmand %vm417_vm3, %vm426_vm9  ;;  %v475_v1 = vsel %vm1246_vm0, %v443_v51, -inf  ;;  %v476_v3 = vsel %vm1246_vm0, %v444_v52, -inf }
  0x66   : > { %vm1278_vm7 = vmand %vm418_vm4, %vm427_vm13  ;;  %v477_v6 = vsel %vm1264_vm5, %v445_v54, -inf  ;;  %v487_v7 = vmax.f32 %v471_v55, %v475_v1  ;;  %v478_v9 = vsel %vm1264_vm5, %v446_v56, -inf  ;;  %v494_v10 = vmax.f32 %v472_v61, %v476_v3 }
  0x67   : > { %vm1292_vm3 = vmand %vm419_vm6, %vm428_vm15  ;;  %v479_v13 = vsel %vm1278_vm7, %v447_v58, -inf  ;;  %v488_v14 = vmax.f32 %v473_v59, %v477_v6  ;;  %v480_v16 = vsel %vm1278_vm7, %v448_v60, -inf  ;;  %v495_v17 = vmax.f32 %v474_v62, %v478_v9 }
  0x68   : > { %vm437_vm4 = vmand %vm420_vm11, %vm429_vm1  ;;  %v481_v18 = vsel %vm1292_vm3, %v449_v0, -inf  ;;  %v489_v19 = vmax.f32 %v487_v7, %v479_v13  ;;  %v482_v20 = vsel %vm1292_vm3, %v450_v2, -inf  ;;  %v496_v21 = vmax.f32 %v494_v10, %v480_v16 }
  0x69   : > { %vm438_vm6 = vmand %vm421_vm12, %vm430_vm2  ;;  %v483_v22 = vsel %vm437_vm4, %v451_v5, -inf  ;;  %v490_v23 = vmax.f32 %v488_v14, %v481_v18  ;;  %v484_v24 = vsel %vm437_vm4, %v452_v8, -inf  ;;  %v497_v25 = vmax.f32 %v495_v17, %v482_v20 }
  0x6a   : > { %v485_v26 = vsel %vm438_vm6, %v453_v12, -inf  ;;  %v491_v27 = vmax.f32 %v489_v19, %v483_v22  ;;  %v486_v28 = vsel %vm438_vm6, %v454_v15, -inf  ;;  %v498_v29 = vmax.f32 %v496_v21, %v484_v24 }
  0x6b   : > { %v492_v30 = vmax.f32 %v490_v23, %v485_v26  ;;  %v499_v31 = vmax.f32 %v497_v25, %v486_v28 }
  0x6d   : > { %v493_v34 = vmax.f32 %v491_v27, %v492_v30  ;;  %v500_v35 = vmax.f32 %v498_v29, %v499_v31 }
  0x6f   : > { %v503_v36 = vmax.f32 %v501_v32, %v493_v34  ;;  %v504_v39 = vmax.f32 %v502_v33, %v500_v35 }
  0x71   : > { %505 = vst [vmem:[#allocation2] sm:$0xff] %v503_v36 }
  0x72   : > { %506 = vst [vmem:[#allocation2 + $0x8] sm:$0xff] %v504_v39 }
  0x73 PF: > { %s507_s26 = sld [smem:[#allocation9 + %s1121_s5]] }
  0x79   : > { %p764_p8 = scmp.ne.s32.totalorder %s507_s26, 1 }
  0x7b   : > { %511 = sbr.rel (%p764_p8) target bundleno = 563 (0x233), region = 68 }
  0x80   : > { %v541_v37 = vld [vmem:[#allocation10 + $0x78] sm:$0xff]  ;;  %v540_v38 = vld [vmem:[#allocation10 + $0x70] sm:$0xff]  ;;  %v539_v42 = vld [vmem:[#allocation10 + $0x68] sm:$0xff]  ;;  %vm647_vm8 = vcmask 523264   ;;  %vm671_vm9 = vcmask 24576  }
  0x81   : > { %v557_v40 = vld [vmem:[#allocation10 + $0xf8] sm:$0xff]  ;;  %559 = vmatpush.msra.mxu0 %v541_v37  ;;  %v556_v41 = vld [vmem:[#allocation10 + $0xf0] sm:$0xff]  ;;  %v555_v43 = vld [vmem:[#allocation10 + $0xe8] sm:$0xff] }
  0x82   : > { %579 = vmatpush.msra.mxu1 %v557_v40  ;;  %v538_v44 = vld [vmem:[#allocation10 + $0x60] sm:$0xff]  ;;  %v537_v46 = vld [vmem:[#allocation10 + $0x58] sm:$0xff]  ;;  %v536_v48 = vld [vmem:[#allocation10 + $0x50] sm:$0xff] }
  0x83   : > { %560 = vmatpush.msra.mxu0 %v540_v38  ;;  %v554_v45 = vld [vmem:[#allocation10 + $0xe0] sm:$0xff]  ;;  %v553_v47 = vld [vmem:[#allocation10 + $0xd8] sm:$0xff]  ;;  %v552_v49 = vld [vmem:[#allocation10 + $0xd0] sm:$0xff] }
  0x84   : > { %580 = vmatpush.msra.mxu1 %v556_v41  ;;  %v535_v50 = vld [vmem:[#allocation10 + $0x48] sm:$0xff]  ;;  %v512_v52 = vld [vmem:[#allocation2] sm:$0xff]  ;;  %v513_v54 = vld [vmem:[#allocation2 + $0x8] sm:$0xff] }
  0x85   : > { %561 = vmatpush.msra.mxu0 %v539_v42  ;;  %v551_v51 = vld [vmem:[#allocation10 + $0xc8] sm:$0xff]  ;;  %v514_v53 = vrot.slane %v512_v52, 4  ;;  %v614_v56 = vld [vmem:[%s1439_s9 + $0x70] sm:$0xff]  ;;  %v520_v59 = vrot.slane %v513_v54, 4  ;;  %v613_v61 = vld [vmem:[%s1439_s9 + $0x68] sm:$0xff] }
  0x86   : > { %581 = vmatpush.msra.mxu1 %v555_v43  ;;  %v615_v55 = vld [vmem:[%s1439_s9 + $0x78] sm:$0xff]  ;;  %v534_v57 = vld [vmem:[#allocation10 + $0x40] sm:$0xff]  ;;  %v533_v62 = vld [vmem:[#allocation10 + $0x38] sm:$0xff] }
  0x87   : > { %562 = vmatpush.msra.mxu0 %v538_v44  ;;  %v550_v58 = vld [vmem:[#allocation10 + $0xc0] sm:$0xff]  ;;  %617 = vmatpush.msra.mxu2 %v615_v55  ;;  %v515_v60 = vmax.f32 %v512_v52, %v514_v53  ;;  %v549_v63 = vld [vmem:[#allocation10 + $0xb8] sm:$0xff]  ;;  %v521_v0 = vmax.f32 %v513_v54, %v520_v59  ;;  %v612_v1 = vld [vmem:[%s1439_s9 + $0x60] sm:$0xff] }
  0x88   : > { %582 = vmatpush.msra.mxu1 %v554_v45  ;;  %v532_v2 = vld [vmem:[#allocation10 + $0x30] sm:$0xff]  ;;  %v611_v6 = vld [vmem:[%s1439_s9 + $0x58] sm:$0xff]  ;;  %v610_v9 = vld [vmem:[%s1439_s9 + $0x50] sm:$0xff] }
  0x89   : > { %563 = vmatpush.msra.mxu0 %v537_v46  ;;  %618 = vmatpush.msra.mxu2 %v614_v56  ;;  %v548_v3 = vld [vmem:[#allocation10 + $0xb0] sm:$0xff]  ;;  %v516_v4 = vrot.slane %v515_v60, 2  ;;  %v522_v5 = vrot.slane %v521_v0, 2  ;;  %v531_v7 = vld [vmem:[#allocation10 + $0x28] sm:$0xff]  ;;  %v530_v10 = vld [vmem:[#allocation10 + $0x20] sm:$0xff] }
  0x8a   : > { %583 = vmatpush.msra.mxu1 %v553_v47  ;;  %v547_v8 = vld [vmem:[#allocation10 + $0xa8] sm:$0xff]  ;;  %v546_v11 = vld [vmem:[#allocation10 + $0xa0] sm:$0xff]  ;;  %v609_v14 = vld [vmem:[%s1439_s9 + $0x48] sm:$0xff] }
  0x8b   : > { %564 = vmatpush.msra.mxu0 %v536_v48  ;;  %619 = vmatpush.msra.mxu2 %v613_v61  ;;  %v517_v12 = vmax.f32 %v515_v60, %v516_v4  ;;  %v523_v13 = vmax.f32 %v521_v0, %v522_v5  ;;  %v529_v15 = vld [vmem:[#allocation10 + $0x18] sm:$0xff]  ;;  %v608_v17 = vld [vmem:[%s1439_s9 + $0x40] sm:$0xff]  ;;  %v607_v22 = vld [vmem:[%s1439_s9 + $0x38] sm:$0xff] }
  0x8c   : > { %584 = vmatpush.msra.mxu1 %v552_v49  ;;  %v545_v16 = vld [vmem:[#allocation10 + $0x98] sm:$0xff]  ;;  %v528_v18 = vld [vmem:[#allocation10 + $0x10] sm:$0xff]  ;;  %v527_v23 = vld [vmem:[#allocation10 + $0x8] sm:$0xff] }
  0x8d   : > { %565 = vmatpush.msra.mxu0 %v535_v50  ;;  %620 = vmatpush.msra.mxu2 %v612_v1  ;;  %v544_v19 = vld [vmem:[#allocation10 + $0x90] sm:$0xff]  ;;  %v518_v20 = vrot.slane %v517_v12, 1  ;;  %v524_v21 = vrot.slane %v523_v13, 1  ;;  %v543_v24 = vld [vmem:[#allocation10 + $0x88] sm:$0xff]  ;;  %v606_v25 = vld [vmem:[%s1439_s9 + $0x30] sm:$0xff] }
  0x8e   : > { %585 = vmatpush.msra.mxu1 %v551_v51  ;;  %v526_v26 = vld [vmem:[#allocation10] sm:$0xff]  ;;  %v605_v30 = vld [vmem:[%s1439_s9 + $0x28] sm:$0xff]  ;;  %v604_v31 = vld [vmem:[%s1439_s9 + $0x20] sm:$0xff] }
  0x8f   : > { %566 = vmatpush.msra.mxu0 %v534_v57  ;;  %621 = vmatpush.msra.mxu2 %v611_v6  ;;  %v519_v27 = vmax.f32 %v517_v12, %v518_v20  ;;  %v542_v28 = vld [vmem:[#allocation10 + $0x80] sm:$0xff]  ;;  %v525_v29 = vmax.f32 %v523_v13, %v524_v21  ;;  %v603_v32 = vld [vmem:[%s1439_s9 + $0x18] sm:$0xff]  ;;  %v601_v34 = vld [vmem:[%s1439_s9 + $0x8] sm:$0xff] }
  0x90   : > { %586 = vmatpush.msra.mxu1 %v550_v58  ;;  %v602_v33 = vld [vmem:[%s1439_s9 + $0x10] sm:$0xff]  ;;  %v600_v35 = vld [vmem:[%s1439_s9] sm:$0xff]  ;;  %v645_v36 = vld [vmem:[%s1441_s11 + $0x38] sm:$0xff] }
  0x91   : > { %567 = vmatpush.msra.mxu0 %v533_v62  ;;  %622 = vmatpush.msra.mxu2 %v610_v9  ;;  %v644_v39 = vld [vmem:[%s1441_s11 + $0x30] sm:$0xff]  ;;  %v643_v37 = vld [vmem:[%s1441_s11 + $0x28] sm:$0xff]  ;;  %v642_v38 = vld [vmem:[%s1441_s11 + $0x20] sm:$0xff] }
  0x92   : > { %587 = vmatpush.msra.mxu1 %v549_v63  ;;  %659 = vmatpush.msra.mxu3 %v645_v36  ;;  %v641_v40 = vld [vmem:[%s1441_s11 + $0x18] sm:$0xff]  ;;  %v558_v41 = vld [vmem:[%s1438_s8] sm:$0x1]  ;;  %v640_v47 = vld [vmem:[%s1441_s11 + $0x10] sm:$0xff] }
  0x93   : > { %568 = vmatpush.msra.mxu0 %v532_v2  ;;  %623 = vmatpush.msra.mxu2 %v609_v14  ;;  %v639_v48 = vld [vmem:[%s1441_s11 + $0x8] sm:$0xff]  ;;  %v638_v49 = vld [vmem:[%s1441_s11] sm:$0xff] }
  0x94   : > { %588 = vmatpush.msra.mxu1 %v548_v3  ;;  %660 = vmatpush.msra.mxu3 %v644_v39  ;;  %v616_v50 = vld [vmem:[%s1440_s10] sm:$0x1] }
  0x95   : > { %569 = vmatpush.msra.mxu0 %v531_v7  ;;  %624 = vmatpush.msra.mxu2 %v608_v17  ;;  %v646_v54 = vld [vmem:[%s1442_s12] sm:$0x1] }
  0x96   : > { %589 = vmatpush.msra.mxu1 %v547_v8  ;;  %661 = vmatpush.msra.mxu3 %v643_v37 }
  0x97   : > { %570 = vmatpush.msra.mxu0 %v530_v10  ;;  %625 = vmatpush.msra.mxu2 %v607_v22 }
  0x98   : > { %590 = vmatpush.msra.mxu1 %v546_v11  ;;  %662 = vmatpush.msra.mxu3 %v642_v38 }
  0x99   : > { %571 = vmatpush.msra.mxu0 %v529_v15  ;;  %626 = vmatpush.msra.mxu2 %v606_v25 }
  0x9a   : > { %591 = vmatpush.msra.mxu1 %v545_v16  ;;  %663 = vmatpush.msra.mxu3 %v641_v40 }
  0x9b   : > { %572 = vmatpush.msra.mxu0 %v528_v18  ;;  %627 = vmatpush.msra.mxu2 %v605_v30 }
  0x9c   : > { %592 = vmatpush.msra.mxu1 %v544_v19  ;;  %664 = vmatpush.msra.mxu3 %v640_v47 }
  0x9d   : > { %573 = vmatpush.msra.mxu0 %v527_v23  ;;  %628 = vmatpush.msra.mxu2 %v604_v31 }
  0x9e   : > { %593 = vmatpush.msra.mxu1 %v543_v24  ;;  %665 = vmatpush.msra.mxu3 %v639_v48 }
  0x9f   : > { %574 = vmatpush.msra.mxu0 %v526_v26  ;;  %629 = vmatpush.msra.mxu2 %v603_v32 }
  0xa0   : > { %594 = vmatpush.msra.mxu1 %v542_v28  ;;  %575 = vmatmul.f32.vlgmr.msra.gmra.mxu0 %v519_v27 }
  0xa1   : > { %595 = vmatmul.f32.vlgmr.msra.gmra.mxu1 %v525_v29  ;;  %630 = vmatpush.msra.mxu2 %v602_v33 }
  0xa2   : > { %666 = vmatpush.msra.mxu3 %v638_v49 }
  0xa3   : > { %631 = vmatpush.msra.mxu2 %v601_v34 }
  0xa5   : > { %632 = vmatpush.msra.mxu2 %v600_v35 }
 0x11d   : > { %v576_v42 = vpop.f32.mrf.mxu0 }
 0x11e   : > { %v596_v43 = vpop.f32.mrf.mxu1  ;;  %v577_v44 = vadd.f32 %v576_v42, %v558_v41 }
 0x120   : > { %v597_v45 = vadd.f32 %v596_v43, %v577_v44 }
 0x122   : > { %v599_v46 = vmax.f32 %v597_v45, 0.0 }
 0x124   : > { %633 = vmatmul.f32.vlgmr.msra.gmra.mxu2 %v599_v46 }
 0x1a7   : > { %v634_v51 = vpop.f32.mrf.mxu2 }
 0x1a8   : > { %v635_v52 = vadd.f32 %v634_v51, %v616_v50 }
 0x1aa   : > { %v637_v53 = vmax.f32 %v635_v52, 0.0 }
 0x1ac   : > { %765 = vmatmul.msk.f32.vlgmr.msra.gmra.mxu3 %vm647_vm8, %v637_v53 }
 0x22f   : > { %v668_v55 = vpop.f32.mrf.mxu3 }
 0x230   : > { %v669_v56 = vadd.f32 %v668_v55, %v646_v54 }
 0x232   : > { %672 = vst.msk [vmem:[%s1174_s24] sm:$0x1] %vm671_vm9, %v669_v56 }
 0x233 PF: > { %s773_s21 = scalar_select %p1135_p4, [#allocation5], [#allocation14] }
 0x234   : > { %s1471_s5 = smov (!%p1135_p4, %s1121_s5), 0  ;;  %s685_s22 = sshll.u32 %s1174_s24, 4  ;;  %s686_s22 = int_to_ptr.vmem [resolvable:$true] %s685_s22 }
 0x235   : > { %s680_s0 = sld [smem:[%s773_s21 + %s1471_s5]]  ;;  %s674_s28 = scalar_lea.sflag [#allocation12], %s335_s2 }
 0x236   : > { %s952_s5 = scalar_lea.hbm %s1443_s13, 2 }
 0x23b   : > { %s683_s26 = scalar_lea.hbm %s1443_s13, %s680_s0 }
 0x23c   : > { %s687_s27 = sshll.u32 %s683_s26, 4  ;;  %s688_s27 = int_to_ptr.hbm [resolvable:$true] %s687_s27 }
 0x23d   : > { %s946_s14 = sshra.s32 %s688_s27, 4  ;;  %s947_s14 = int_to_ptr.hbm [resolvable:$true] %s946_s14 }
 0x23e   : > { %s948_s16 = scalar_lea.hbm %s947_s14, 1  ;;  %p953_p12 = scmp.lt.s32.totalorder %s947_s14, %s1443_s13 }
 0x23f   : > { %p949_p9 = scmp.ne.s32.totalorder %s947_s14, %s948_s16  ;;  %p954_p13 = scmp.lt.s32.totalorder %s952_s5, %s948_s16 }
 0x241   : > { %p950_p10 = pnand %p949_p9, %p1135_p4  ;;  %p955_p0 = por %p954_p13, %p953_p12 }
 0x243   : > { %p951_p11 = pneg %p950_p10 }
 0x245   : > { %p956_p1 = pnand %p955_p0, %p951_p11 }
 0x247   : > { %959 = shalt.err (!%p956_p1)
}
 0x248   : > { %775 = dma.vmem_to_hbm [thread:$0]  (%p1135_p4), %s686_s22, 16, %s688_s27, %s674_s28  }
 0x249 PF: > { %p787_p2 = scmp.ge.s32.totalorder %s1000_s30, 2  ;;  %s699_s2 = sand.u32 1, %s988_s3  }
 0x24a   : > { %s700_s0 = scalar_lea.sflag [#allocation12], %s699_s2 }
 0x24b   : > { %p782_p3 = pnand %p787_p2, %p1140_p6 }
 0x24d   : > { %p783_p5 = pneg %p782_p3 }
 0x24f   : > { %983 = dma.done.wait (%p783_p5), %s700_s0, 16  }
 0x250   : > { %985 = vsyncadd (%p783_p5), %s700_s0, 4294967280  ;;  %p57_p7 = scmp.ge.s32.totalorder %s1125_s15, 5   ;;  %s1464_s3 = smov %s992_s29 }
 0x251   : > { %s1465_s29 = smov %s996_s4  ;;  %s1466_s4 = smov %s1150_s23 }
 0x252   : > { %s1467_s30 = smov %s1125_s15  ;;  %59 = sbr.rel (!%p57_p7) target bundleno = 19 (0x13), region = 104 }
 0x257   :  { %705 = vsyncpa [#allocation11], 1 }
 0x258   :  { %707 = vsyncpa [#allocation11 + $0x1], 1 }
 0x259   :  { %708 = vsyncpa [#allocation12], 1 }
 0x25a   :  { %710 = vsyncpa [#allocation12 + $0x1], 1 }

</bundles_post_ra>
